<compile_context>
chip_gen: v7x
topology: tpu7x:2x2x1
jax: 0.10.0
libtpu: 0.0.40
codegen_flags: <defaults>
</compile_context>

<pallas_src>
import functools

import jax
import jax.numpy as jnp
from jax.experimental import pallas as pl
from jax.experimental.pallas import tpu as pltpu

# TODO(synk): `Similarity()` is constructed with no args in the source; the canonical
# SimCSE Similarity uses a temperature -- we default temp = 0.05 here.
TEMP = 0.05
# torch CosineSimilarity clamps |a||b| at 1e-8. Pre-normalizing instead clamps each
# squared norm at 1e-8 (per-vector norm floor 1e-4) -- identical for non-degenerate
# embeddings.
NORM_SQ_EPS = 1e-8
NEG_INF = -1e30


def _round_up(x, m):
    return (x + m - 1) // m * m


def _l2_normalize(x):
    x = x.astype(jnp.float32)
    sq = jnp.sum(x * x, axis=-1, keepdims=True)
    return x * jax.lax.rsqrt(jnp.maximum(sq, NORM_SQ_EPS))


def _tpu_vmem_budget():
    """~80% of this generation's per-core VMEM (v5e/v6e 128 MiB, v7x 64 MiB)."""
    cap = 64 << 20                                   # conservative default (v7x)
    try:
        info = pltpu.get_tpu_info()
        cap = int(getattr(info, "vmem_capacity_bytes", cap) or cap)
    except Exception:
        pass
    return int(cap * 0.8)


def _tile_n_candidates(n):
    """Row-tile candidates (multiples of 8), preferring minimal row padding, then
    bigger tiles (fewer grid steps / less re-read of the column blocks)."""
    n_pad8 = _round_up(n, 8)
    cands = {t for t in (128, 256, 512) if t <= n_pad8}
    if n_pad8 <= 512:
        cands.add(n_pad8)
    if not cands:
        cands.add(n_pad8)
    return sorted(cands, key=lambda t: (_round_up(n, t), -t))


def _pick_tiles(n, c, d_pad, esz, budget):
    """Pick (tile_n, tile_c) so the estimated VMEM working set fits `budget`."""
    c_full = _round_up(c, 128)

    def est(tn, tc, z23_bufs):
        return (4 * tn * d_pad * esz            # z1 + matching-z2 row tiles (x2 bufs)
                + z23_bufs * tc * d_pad * esz   # [z2; z3] column tile(s)
                + 2 * tn * tc * 4               # logits output blocks (f32, x2 bufs)
                + 2 * tn * 128 * 4              # row-loss output blocks
                + 2 * tn * 4                    # m / l scratch
                + 3 * tn * tc * 4)              # in-kernel f32 temporaries (exp/mask)

    # Column-tile candidates: full width first (resident RHS), then low-waste
    # fractions of it, then standard power-of-two widths.
    tc_cands = {c_full}
    for div in (2, 4, 8, 16, 32):
        tc_cands.add(min(c_full, _round_up(-(-c_full // div), 128)))
    for t in (4096, 2048, 1024, 512, 256, 128):
        if t < c_full:
            tc_cands.add(t)

    for tn in _tile_n_candidates(n):
        best = None
        for tc in tc_cands:
            bufs = 1 if tc >= c_full else 2     # resident column block -> 1 buffer
            e = est(tn, tc, bufs)
            if e > budget:
                continue
            key = (_round_up(n, tn) * _round_up(c, tc), -(tn * tc))
            if best is None or key < best[0]:
                best = (key, tn, tc, e)
        if best is not None:
            return best[1], best[2], best[3]
    # Nothing fits the estimate -- fall back to the smallest tiles and let the
    # compiler try (vmem_limit is already the generation-aware budget).
    tn = min(_tile_n_candidates(n))
    return tn, 128, est(tn, 128, 2)


def _event_hyper_kernel(z1_ref, z2_ref, z23_ref, cos_ref, rowloss_ref,
                        m_ref, l_ref, *,
                        n_valid, c_valid, c_pad, tile_n, tile_c,
                        hard_negative_weight):
    k = pl.program_id(1)

    @pl.when(k == 0)
    def _init():
        m_ref[...] = jnp.full(m_ref.shape, NEG_INF, dtype=jnp.float32)
        l_ref[...] = jnp.zeros(l_ref.shape, dtype=jnp.float32)

    # One MXU matmul per (row-tile, col-tile), contracting the feature dim of both
    # operands (no transpose).  Operands were pre-normalized (1/temp folded into z1)
    # and possibly cast to bf16 in the wrapper; accumulation stays f32.
    logits = jax.lax.dot_general(
        z1_ref[...], z23_ref[...], (((1,), (1,)), ((), ())),
        preferred_element_type=jnp.float32)             # (tile_n, tile_c)

    if hard_negative_weight != 0.0:
        # weights[i, N + i] += w  (inert: the module uses w == 0).
        rows = (jax.lax.broadcasted_iota(jnp.int32, logits.shape, 0)
                + pl.program_id(0) * tile_n)
        cols = jax.lax.broadcasted_iota(jnp.int32, logits.shape, 1) + k * tile_c
        logits = logits + jnp.where(cols == rows + n_valid,
                                    jnp.float32(hard_negative_weight),
                                    jnp.float32(0.0))

    if c_pad != c_valid:
        # Lane-padding columns (zero rows of z23) would otherwise contribute exp(0)
        # to the softmax -- mask them.  Skipped entirely when there is no padding.
        cols = jax.lax.broadcasted_iota(jnp.int32, logits.shape, 1) + k * tile_c
        logits = jnp.where(cols < c_valid, logits, jnp.float32(NEG_INF))

    cos_ref[...] = logits

    # Online logsumexp across column tiles.
    m_prev = m_ref[...]
    m_new = jnp.maximum(m_prev, jnp.max(logits, axis=-1, keepdims=True))
    l_ref[...] = (l_ref[...] * jnp.exp(m_prev - m_new)
                  + jnp.sum(jnp.exp(logits - m_new), axis=-1, keepdims=True))
    m_ref[...] = m_new

    @pl.when(k == pl.num_programs(1) - 1)
    def _finalize():
        # Label logit for global row r is <z1n_r, z2n_r>; both operands carry the
        # same (possibly bf16) rounding as the MXU matmul, so the CE term is
        # precision-consistent with the logits.
        z1f = z1_ref[...].astype(jnp.float32)
        z2f = z2_ref[...].astype(jnp.float32)
        label = jnp.sum(z1f * z2f, axis=-1, keepdims=True)        # (tile_n, 1)
        lse = m_ref[...] + jnp.log(l_ref[...])
        # Lane-dense (unmasked) store: broadcast the per-row CE term across lanes.
        rowloss_ref[...] = jnp.broadcast_to(lse - label, rowloss_ref.shape)


def event_hyper_forward(z1, z2, z3, *, temp=TEMP, hard_negative_weight=0.0,
                        matmul_dtype=jnp.bfloat16):
    """Returns (loss, cos_sim) matching Event_Hyper.forward.

    matmul_dtype: dtype of the MXU operands (accumulation is always f32).
      jnp.bfloat16 (default) runs the MXU at full rate and halves the VMEM
      footprint of the [z2; z3] block; pass None for exact f32 operands.
    """
    n, d = z1.shape
    m = z3.shape[0]
    c = n + m

    # ---- hoisted preprocessing: normalize once, fold 1/temp, pad lane-dense ----
    z1n = _l2_normalize(z1) * jnp.float32(1.0 / temp)
    z23n = _l2_normalize(jnp.concatenate([z2, z3], axis=0))
    z2n = z23n[:n]                      # positive (label) rows, already normalized

    op_dtype = jnp.float32 if matmul_dtype is None else matmul_dtype
    esz = jnp.dtype(op_dtype).itemsize
    d_pad = _round_up(d, 128)           # lane-dense feature dim

    budget = _tpu_vmem_budget()
    tile_n, tile_c, est_bytes = _pick_tiles(n, c, d_pad, esz, budget)
    n_pad = _round_up(n, tile_n)
    c_pad = _round_up(c, tile_c)
    num_k = c_pad // tile_c
    vmem_limit = int(min(budget, est_bytes + (32 << 20)))

    def _pad_cast(x, rows):
        r, dd = x.shape
        return jnp.pad(x, ((0, rows - r), (0, d_pad - dd))).astype(op_dtype)

    z1p = _pad_cast(z1n, n_pad)
    z2p = _pad_cast(z2n, n_pad)
    z23p = _pad_cast(z23n, c_pad)

    kernel = functools.partial(
        _event_hyper_kernel,
        n_valid=n, c_valid=c, c_pad=c_pad, tile_n=tile_n, tile_c=tile_c,
        hard_negative_weight=float(hard_negative_weight))

    def _call(z23_single_buffered):
        if z23_single_buffered:
            # Block index never changes -> one buffer halves the biggest VMEM user.
            z23_spec = pl.BlockSpec((tile_c, d_pad), lambda i, k: (k, 0),
                                    pipeline_mode=pl.Buffered(1))
        else:
            z23_spec = pl.BlockSpec((tile_c, d_pad), lambda i, k: (k, 0))
        return pl.pallas_call(
            kernel,
            out_shape=(
                jax.ShapeDtypeStruct((n_pad, c_pad), jnp.float32),   # logits (padded)
                jax.ShapeDtypeStruct((n_pad, 128), jnp.float32),     # per-row CE terms
            ),
            grid_spec=pltpu.PrefetchScalarGridSpec(
                num_scalar_prefetch=0,
                grid=(n_pad // tile_n, num_k),        # rows parallel, cols last
                in_specs=[
                    pl.BlockSpec((tile_n, d_pad), lambda i, k: (i, 0)),   # z1 rows
                    pl.BlockSpec((tile_n, d_pad), lambda i, k: (i, 0)),   # z2 rows
                    z23_spec,                                             # [z2; z3]
                ],
                out_specs=(
                    pl.BlockSpec((tile_n, tile_c), lambda i, k: (i, k)),
                    pl.BlockSpec((tile_n, 128), lambda i, k: (i, 0)),
                ),
                scratch_shapes=[
                    pltpu.VMEM((tile_n, 1), jnp.float32),   # running row max
                    pltpu.VMEM((tile_n, 1), jnp.float32),   # running sum(exp)
                ],
            ),
            compiler_params=pltpu.CompilerParams(
                dimension_semantics=("parallel", "arbitrary"),
                vmem_limit_bytes=vmem_limit,
            ),
        )(z1p, z2p, z23p)

    try:
        cos_full, row_losses = _call(num_k == 1)
    except Exception:
        if num_k != 1:
            raise
        # Conservative fallback if this JAX build rejects single-buffering.
        cos_full, row_losses = _call(False)

    cos_sim = cos_full[:n, :c]
    loss = jnp.sum(row_losses[:n, 0]) / jnp.float32(n)
    return loss, cos_sim


def _reference(z1, z2, z3):
    def cos(a, b):
        na = jnp.linalg.norm(a, axis=-1, keepdims=True)
        nb = jnp.linalg.norm(b, axis=-1, keepdims=True)
        return (a @ b.T) / jnp.maximum(na * nb.T, 1e-8) / TEMP

    sim12 = cos(z1, z2)
    sim13 = cos(z1, z3)
    logits = jnp.concatenate([sim12, sim13], axis=1)
    n = z1.shape[0]
    logp = jax.nn.log_softmax(logits, axis=-1)
    loss = -jnp.mean(logp[jnp.arange(n), jnp.arange(n)])
    return loss, logits


if __name__ == "__main__":
    # Small shapes: batch of N=8 event embeddings, hidden dim D=32.
    N, D = 8, 32
    key = jax.random.PRNGKey(0)
    k1, k2, k3 = jax.random.split(key, 3)
    z1 = jax.random.normal(k1, (N, D), dtype=jnp.float32)
    z2 = jax.random.normal(k2, (N, D), dtype=jnp.float32)
    z3 = jax.random.normal(k3, (N, D), dtype=jnp.float32)

    ref_loss, ref_cos = _reference(z1, z2, z3)

    # Exact path (f32 MXU operands): tight check against the pure-JAX reference.
    loss32, cos32 = event_hyper_forward(z1, z2, z3, matmul_dtype=None)
    jax.block_until_ready((loss32, cos32))
    assert cos32.shape == ref_cos.shape
    assert jnp.allclose(cos32, ref_cos, atol=1e-4, rtol=1e-4)
    assert jnp.allclose(loss32, ref_loss, atol=1e-4, rtol=1e-4)

    # Default fast path (bf16 MXU operands, f32 accumulation): looser tolerance
    # because the logits carry bf16 operand rounding (~0.4% of |logit| <= 1/temp).
    loss16, cos16 = event_hyper_forward(z1, z2, z3)
    jax.block_until_ready((loss16, cos16))
    assert cos16.shape == ref_cos.shape
    assert jnp.allclose(cos16, ref_cos, atol=0.25, rtol=0.02)
    assert jnp.allclose(loss16, ref_loss, atol=0.25, rtol=0.02)

    print("KERNEL_OK")
</pallas_src>

<mosaic_0001>
module attributes {stable_mosaic.version = 11 : i64} {
  func.func @_event_hyper_kernel(%arg0: i32, %arg1: i32, %arg2: memref<8x128xf32, #tpu.memory_space<vmem>>, %arg3: memref<8x128xf32, #tpu.memory_space<vmem>>, %arg4: memref<128x128xf32, #tpu.memory_space<vmem>>, %arg5: memref<8x128xf32, #tpu.memory_space<vmem>>, %arg6: memref<8x128xf32, #tpu.memory_space<vmem>>, %arg7: memref<8x1xf32, #tpu.memory_space<vmem>>, %arg8: memref<8x1xf32, #tpu.memory_space<vmem>>) attributes {dimension_semantics = [#tpu.dimension_semantics<parallel>, #tpu.dimension_semantics<arbitrary>], iteration_bounds = array<i64: 1, 1>, scalar_prefetch = 0 : i64, scratch_operands = 2 : i64, tpu.core_type = #tpu.core_type<tc>, window_params = [{transform_indices = @transform_0, window_bounds = array<i64: 8, 128>}, {transform_indices = @transform_1, window_bounds = array<i64: 8, 128>}, {pipeline_mode = #tpu.pipeline_mode<synchronous>, transform_indices = @transform_2, window_bounds = array<i64: 128, 128>}, {transform_indices = @transform_3, window_bounds = array<i64: 8, 128>}, {transform_indices = @transform_4, window_bounds = array<i64: 8, 128>}]} {
    %c0_i32 = arith.constant 0 : i32
    %0 = arith.cmpi eq, %arg1, %c0_i32 : i32
    %1 = arith.extui %0 : i1 to i32
    %c0_i32_0 = arith.constant 0 : i32
    %2 = arith.cmpi ne, %1, %c0_i32_0 : i32
    scf.if %2 {
      %cst_19 = arith.constant -1.000000e+30 : f32
      %34 = vector.broadcast %cst_19 : f32 to vector<8x1xf32>
      %c0_20 = arith.constant 0 : index
      %c0_21 = arith.constant 0 : index
      %35 = vector.load %arg7[%c0_20, %c0_21] : memref<8x1xf32, #tpu.memory_space<vmem>>, vector<8x1xf32>
      tpu.vector_store %arg7[%c0_20, %c0_21], %34 {strides = array<i32>} : memref<8x1xf32, #tpu.memory_space<vmem>>, vector<8x1xf32>,
      %cst_22 = arith.constant 0.000000e+00 : f32
      %36 = vector.broadcast %cst_22 : f32 to vector<8x1xf32>
      %c0_23 = arith.constant 0 : index
      %c0_24 = arith.constant 0 : index
      %37 = vector.load %arg8[%c0_23, %c0_24] : memref<8x1xf32, #tpu.memory_space<vmem>>, vector<8x1xf32>
      tpu.vector_store %arg8[%c0_23, %c0_24], %36 {strides = array<i32>} : memref<8x1xf32, #tpu.memory_space<vmem>>, vector<8x1xf32>,
    } else {
    }
    %c0 = arith.constant 0 : index
    %c0_1 = arith.constant 0 : index
    %3 = vector.load %arg2[%c0, %c0_1] : memref<8x128xf32, #tpu.memory_space<vmem>>, vector<8x128xf32>
    %c0_2 = arith.constant 0 : index
    %c0_3 = arith.constant 0 : index
    %4 = vector.load %arg4[%c0_2, %c0_3] : memref<128x128xf32, #tpu.memory_space<vmem>>, vector<128x128xf32>
    %cst = arith.constant dense<0.000000e+00> : vector<8x128xf32>
    %5 = tpu.matmul %3, %4, %cst {dimension_numbers = #tpu.dot_dimension_numbers<[1], [1], [0], [0], [0, 0, 1, 0], [], []>} : vector<8x128xf32>, vector<128x128xf32>, vector<8x128xf32> -> vector<8x128xf32>
    %6 = tpu.iota {dimensions = array<i32: 1>} : vector<8x128xi32>
    %c128_i32 = arith.constant 128 : i32
    %7 = arith.muli %arg1, %c128_i32 : i32
    %8 = vector.broadcast %7 : i32 to vector<8x128xi32>
    %9 = arith.addi %6, %8 : vector<8x128xi32>
    %c16_i32 = arith.constant 16 : i32
    %10 = vector.broadcast %c16_i32 : i32 to vector<8x128xi32>
    %11 = arith.cmpi slt, %9, %10 : vector<8x128xi32>
    %cst_4 = arith.constant -1.000000e+30 : f32
    %12 = vector.broadcast %cst_4 : f32 to vector<8x128xf32>
    %13 = arith.select %11, %5, %12 : vector<8x128xi1>, vector<8x128xf32>
    %c0_5 = arith.constant 0 : index
    %c0_6 = arith.constant 0 : index
    %14 = vector.load %arg5[%c0_5, %c0_6] : memref<8x128xf32, #tpu.memory_space<vmem>>, vector<8x128xf32>
    tpu.vector_store %arg5[%c0_5, %c0_6], %13 {strides = array<i32>} : memref<8x128xf32, #tpu.memory_space<vmem>>, vector<8x128xf32>,
    %c0_7 = arith.constant 0 : index
    %c0_8 = arith.constant 0 : index
    %15 = vector.load %arg7[%c0_7, %c0_8] : memref<8x1xf32, #tpu.memory_space<vmem>>, vector<8x1xf32>
    %cst_9 = arith.constant dense<0xFF800000> : vector<8xf32>
    %16 = vector.multi_reduction <maximumf>, %13, %cst_9 [1] : vector<8x128xf32> to vector<8xf32>
    %17 = vector.shape_cast %16 : vector<8xf32> to vector<8x1xf32>
    %18 = arith.maximumf %15, %17 : vector<8x1xf32>
    %c0_10 = arith.constant 0 : index
    %c0_11 = arith.constant 0 : index
    %19 = vector.load %arg8[%c0_10, %c0_11] : memref<8x1xf32, #tpu.memory_space<vmem>>, vector<8x1xf32>
    %20 = arith.subf %15, %18 : vector<8x1xf32>
    %21 = math.exp %20 : vector<8x1xf32>
    %22 = arith.mulf %19, %21 : vector<8x1xf32>
    %23 = vector.broadcast %18 : vector<8x1xf32> to vector<8x128xf32>
    %24 = arith.subf %13, %23 : vector<8x128xf32>
    %25 = math.exp %24 : vector<8x128xf32>
    %cst_12 = arith.constant dense<0.000000e+00> : vector<8xf32>
    %26 = vector.multi_reduction <add>, %25, %cst_12 [1] : vector<8x128xf32> to vector<8xf32>
    %27 = vector.shape_cast %26 : vector<8xf32> to vector<8x1xf32>
    %28 = arith.addf %22, %27 : vector<8x1xf32>
    %c0_13 = arith.constant 0 : index
    %c0_14 = arith.constant 0 : index
    %29 = vector.load %arg8[%c0_13, %c0_14] : memref<8x1xf32, #tpu.memory_space<vmem>>, vector<8x1xf32>
    tpu.vector_store %arg8[%c0_13, %c0_14], %28 {strides = array<i32>} : memref<8x1xf32, #tpu.memory_space<vmem>>, vector<8x1xf32>,
    %c0_15 = arith.constant 0 : index
    %c0_16 = arith.constant 0 : index
    %30 = vector.load %arg7[%c0_15, %c0_16] : memref<8x1xf32, #tpu.memory_space<vmem>>, vector<8x1xf32>
    tpu.vector_store %arg7[%c0_15, %c0_16], %18 {strides = array<i32>} : memref<8x1xf32, #tpu.memory_space<vmem>>, vector<8x1xf32>,
    %c0_i32_17 = arith.constant 0 : i32
    %31 = arith.cmpi eq, %arg1, %c0_i32_17 : i32
    %32 = arith.extui %31 : i1 to i32
    %c0_i32_18 = arith.constant 0 : i32
    %33 = arith.cmpi ne, %32, %c0_i32_18 : i32
    scf.if %33 {
      %c0_19 = arith.constant 0 : index
      %c0_20 = arith.constant 0 : index
      %34 = vector.load %arg2[%c0_19, %c0_20] : memref<8x128xf32, #tpu.memory_space<vmem>>, vector<8x128xf32>
      %c0_21 = arith.constant 0 : index
      %c0_22 = arith.constant 0 : index
      %35 = vector.load %arg3[%c0_21, %c0_22] : memref<8x128xf32, #tpu.memory_space<vmem>>, vector<8x128xf32>
      %36 = arith.mulf %34, %35 : vector<8x128xf32>
      %cst_23 = arith.constant dense<0.000000e+00> : vector<8xf32>
      %37 = vector.multi_reduction <add>, %36, %cst_23 [1] : vector<8x128xf32> to vector<8xf32>
      %38 = vector.shape_cast %37 : vector<8xf32> to vector<8x1xf32>
      %c0_24 = arith.constant 0 : index
      %c0_25 = arith.constant 0 : index
      %39 = vector.load %arg7[%c0_24, %c0_25] : memref<8x1xf32, #tpu.memory_space<vmem>>, vector<8x1xf32>
      %c0_26 = arith.constant 0 : index
      %c0_27 = arith.constant 0 : index
      %40 = vector.load %arg8[%c0_26, %c0_27] : memref<8x1xf32, #tpu.memory_space<vmem>>, vector<8x1xf32>
      %41 = math.log %40 : vector<8x1xf32>
      %42 = arith.addf %39, %41 : vector<8x1xf32>
      %43 = arith.subf %42, %38 : vector<8x1xf32>
      %44 = vector.shape_cast %43 : vector<8x1xf32> to vector<8x1xf32>
      %45 = vector.broadcast %44 : vector<8x1xf32> to vector<8x128xf32>
      %c0_28 = arith.constant 0 : index
      %c0_29 = arith.constant 0 : index
      %46 = vector.load %arg6[%c0_28, %c0_29] : memref<8x128xf32, #tpu.memory_space<vmem>>, vector<8x128xf32>
      tpu.vector_store %arg6[%c0_28, %c0_29], %45 {strides = array<i32>} : memref<8x128xf32, #tpu.memory_space<vmem>>, vector<8x128xf32>,
    } else {
    }
    return
  }
  func.func @transform_0(%arg0: i32, %arg1: i32) -> (i32, i32) {
    %c0_i32 = arith.constant 0 : i32
    %c0_i32_0 = arith.constant 0 : i32
    return %arg0, %c0_i32 : i32, i32
  }
  func.func @transform_1(%arg0: i32, %arg1: i32) -> (i32, i32) {
    %c0_i32 = arith.constant 0 : i32
    %c0_i32_0 = arith.constant 0 : i32
    return %arg0, %c0_i32 : i32, i32
  }
  func.func @transform_2(%arg0: i32, %arg1: i32) -> (i32, i32) {
    %c0_i32 = arith.constant 0 : i32
    %c0_i32_0 = arith.constant 0 : i32
    return %arg1, %c0_i32 : i32, i32
  }
  func.func @transform_3(%arg0: i32, %arg1: i32) -> (i32, i32) {
    %c0_i32 = arith.constant 0 : i32
    return %arg0, %arg1 : i32, i32
  }
  func.func @transform_4(%arg0: i32, %arg1: i32) -> (i32, i32) {
    %c0_i32 = arith.constant 0 : i32
    %c0_i32_0 = arith.constant 0 : i32
    return %arg0, %c0_i32 : i32, i32
  }
}

module attributes {stable_mosaic.version = 11 : i64} {
  func.func @_event_hyper_kernel(%arg0: i32, %arg1: i32, %arg2: memref<8x128xf32, #tpu.memory_space<vmem>>, %arg3: memref<8x128xf32, #tpu.memory_space<vmem>>, %arg4: memref<128x128xf32, #tpu.memory_space<vmem>>, %arg5: memref<8x128xf32, #tpu.memory_space<vmem>>, %arg6: memref<8x128xf32, #tpu.memory_space<vmem>>, %arg7: memref<8x1xf32, #tpu.memory_space<vmem>>, %arg8: memref<8x1xf32, #tpu.memory_space<vmem>>) attributes {dimension_semantics = [#tpu.dimension_semantics<parallel>, #tpu.dimension_semantics<arbitrary>], iteration_bounds = array<i64: 1, 1>, scalar_prefetch = 0 : i64, scratch_operands = 2 : i64, tpu.core_type = #tpu.core_type<tc>, window_params = [{transform_indices = @transform_0, window_bounds = array<i64: 8, 128>}, {transform_indices = @transform_1, window_bounds = array<i64: 8, 128>}, {transform_indices = @transform_2, window_bounds = array<i64: 128, 128>}, {transform_indices = @transform_3, window_bounds = array<i64: 8, 128>}, {transform_indices = @transform_4, window_bounds = array<i64: 8, 128>}]} {
    %c0_i32 = arith.constant 0 : i32
    %0 = arith.cmpi eq, %arg1, %c0_i32 : i32
    %1 = arith.extui %0 : i1 to i32
    %c0_i32_0 = arith.constant 0 : i32
    %2 = arith.cmpi ne, %1, %c0_i32_0 : i32
    scf.if %2 {
      %cst_19 = arith.constant -1.000000e+30 : f32
      %34 = vector.broadcast %cst_19 : f32 to vector<8x1xf32>
      %c0_20 = arith.constant 0 : index
      %c0_21 = arith.constant 0 : index
      %35 = vector.load %arg7[%c0_20, %c0_21] : memref<8x1xf32, #tpu.memory_space<vmem>>, vector<8x1xf32>
      tpu.vector_store %arg7[%c0_20, %c0_21], %34 {strides = array<i32>} : memref<8x1xf32, #tpu.memory_space<vmem>>, vector<8x1xf32>,
      %cst_22 = arith.constant 0.000000e+00 : f32
      %36 = vector.broadcast %cst_22 : f32 to vector<8x1xf32>
      %c0_23 = arith.constant 0 : index
      %c0_24 = arith.constant 0 : index
      %37 = vector.load %arg8[%c0_23, %c0_24] : memref<8x1xf32, #tpu.memory_space<vmem>>, vector<8x1xf32>
      tpu.vector_store %arg8[%c0_23, %c0_24], %36 {strides = array<i32>} : memref<8x1xf32, #tpu.memory_space<vmem>>, vector<8x1xf32>,
    } else {
    }
    %c0 = arith.constant 0 : index
    %c0_1 = arith.constant 0 : index
    %3 = vector.load %arg2[%c0, %c0_1] : memref<8x128xf32, #tpu.memory_space<vmem>>, vector<8x128xf32>
    %c0_2 = arith.constant 0 : index
    %c0_3 = arith.constant 0 : index
    %4 = vector.load %arg4[%c0_2, %c0_3] : memref<128x128xf32, #tpu.memory_space<vmem>>, vector<128x128xf32>
    %cst = arith.constant dense<0.000000e+00> : vector<8x128xf32>
    %5 = tpu.matmul %3, %4, %cst {dimension_numbers = #tpu.dot_dimension_numbers<[1], [1], [0], [0], [0, 0, 1, 0], [], []>} : vector<8x128xf32>, vector<128x128xf32>, vector<8x128xf32> -> vector<8x128xf32>
    %6 = tpu.iota {dimensions = array<i32: 1>} : vector<8x128xi32>
    %c128_i32 = arith.constant 128 : i32
    %7 = arith.muli %arg1, %c128_i32 : i32
    %8 = vector.broadcast %7 : i32 to vector<8x128xi32>
    %9 = arith.addi %6, %8 : vector<8x128xi32>
    %c16_i32 = arith.constant 16 : i32
    %10 = vector.broadcast %c16_i32 : i32 to vector<8x128xi32>
    %11 = arith.cmpi slt, %9, %10 : vector<8x128xi32>
    %cst_4 = arith.constant -1.000000e+30 : f32
    %12 = vector.broadcast %cst_4 : f32 to vector<8x128xf32>
    %13 = arith.select %11, %5, %12 : vector<8x128xi1>, vector<8x128xf32>
    %c0_5 = arith.constant 0 : index
    %c0_6 = arith.constant 0 : index
    %14 = vector.load %arg5[%c0_5, %c0_6] : memref<8x128xf32, #tpu.memory_space<vmem>>, vector<8x128xf32>
    tpu.vector_store %arg5[%c0_5, %c0_6], %13 {strides = array<i32>} : memref<8x128xf32, #tpu.memory_space<vmem>>, vector<8x128xf32>,
    %c0_7 = arith.constant 0 : index
    %c0_8 = arith.constant 0 : index
    %15 = vector.load %arg7[%c0_7, %c0_8] : memref<8x1xf32, #tpu.memory_space<vmem>>, vector<8x1xf32>
    %cst_9 = arith.constant dense<0xFF800000> : vector<8xf32>
    %16 = vector.multi_reduction <maximumf>, %13, %cst_9 [1] : vector<8x128xf32> to vector<8xf32>
    %17 = vector.shape_cast %16 : vector<8xf32> to vector<8x1xf32>
    %18 = arith.maximumf %15, %17 : vector<8x1xf32>
    %c0_10 = arith.constant 0 : index
    %c0_11 = arith.constant 0 : index
    %19 = vector.load %arg8[%c0_10, %c0_11] : memref<8x1xf32, #tpu.memory_space<vmem>>, vector<8x1xf32>
    %20 = arith.subf %15, %18 : vector<8x1xf32>
    %21 = math.exp %20 : vector<8x1xf32>
    %22 = arith.mulf %19, %21 : vector<8x1xf32>
    %23 = vector.broadcast %18 : vector<8x1xf32> to vector<8x128xf32>
    %24 = arith.subf %13, %23 : vector<8x128xf32>
    %25 = math.exp %24 : vector<8x128xf32>
    %cst_12 = arith.constant dense<0.000000e+00> : vector<8xf32>
    %26 = vector.multi_reduction <add>, %25, %cst_12 [1] : vector<8x128xf32> to vector<8xf32>
    %27 = vector.shape_cast %26 : vector<8xf32> to vector<8x1xf32>
    %28 = arith.addf %22, %27 : vector<8x1xf32>
    %c0_13 = arith.constant 0 : index
    %c0_14 = arith.constant 0 : index
    %29 = vector.load %arg8[%c0_13, %c0_14] : memref<8x1xf32, #tpu.memory_space<vmem>>, vector<8x1xf32>
    tpu.vector_store %arg8[%c0_13, %c0_14], %28 {strides = array<i32>} : memref<8x1xf32, #tpu.memory_space<vmem>>, vector<8x1xf32>,
    %c0_15 = arith.constant 0 : index
    %c0_16 = arith.constant 0 : index
    %30 = vector.load %arg7[%c0_15, %c0_16] : memref<8x1xf32, #tpu.memory_space<vmem>>, vector<8x1xf32>
    tpu.vector_store %arg7[%c0_15, %c0_16], %18 {strides = array<i32>} : memref<8x1xf32, #tpu.memory_space<vmem>>, vector<8x1xf32>,
    %c0_i32_17 = arith.constant 0 : i32
    %31 = arith.cmpi eq, %arg1, %c0_i32_17 : i32
    %32 = arith.extui %31 : i1 to i32
    %c0_i32_18 = arith.constant 0 : i32
    %33 = arith.cmpi ne, %32, %c0_i32_18 : i32
    scf.if %33 {
      %c0_19 = arith.constant 0 : index
      %c0_20 = arith.constant 0 : index
      %34 = vector.load %arg2[%c0_19, %c0_20] : memref<8x128xf32, #tpu.memory_space<vmem>>, vector<8x128xf32>
      %c0_21 = arith.constant 0 : index
      %c0_22 = arith.constant 0 : index
      %35 = vector.load %arg3[%c0_21, %c0_22] : memref<8x128xf32, #tpu.memory_space<vmem>>, vector<8x128xf32>
      %36 = arith.mulf %34, %35 : vector<8x128xf32>
      %cst_23 = arith.constant dense<0.000000e+00> : vector<8xf32>
      %37 = vector.multi_reduction <add>, %36, %cst_23 [1] : vector<8x128xf32> to vector<8xf32>
      %38 = vector.shape_cast %37 : vector<8xf32> to vector<8x1xf32>
      %c0_24 = arith.constant 0 : index
      %c0_25 = arith.constant 0 : index
      %39 = vector.load %arg7[%c0_24, %c0_25] : memref<8x1xf32, #tpu.memory_space<vmem>>, vector<8x1xf32>
      %c0_26 = arith.constant 0 : index
      %c0_27 = arith.constant 0 : index
      %40 = vector.load %arg8[%c0_26, %c0_27] : memref<8x1xf32, #tpu.memory_space<vmem>>, vector<8x1xf32>
      %41 = math.log %40 : vector<8x1xf32>
      %42 = arith.addf %39, %41 : vector<8x1xf32>
      %43 = arith.subf %42, %38 : vector<8x1xf32>
      %44 = vector.shape_cast %43 : vector<8x1xf32> to vector<8x1xf32>
      %45 = vector.broadcast %44 : vector<8x1xf32> to vector<8x128xf32>
      %c0_28 = arith.constant 0 : index
      %c0_29 = arith.constant 0 : index
      %46 = vector.load %arg6[%c0_28, %c0_29] : memref<8x128xf32, #tpu.memory_space<vmem>>, vector<8x128xf32>
      tpu.vector_store %arg6[%c0_28, %c0_29], %45 {strides = array<i32>} : memref<8x128xf32, #tpu.memory_space<vmem>>, vector<8x128xf32>,
    } else {
    }
    return
  }
  func.func @transform_0(%arg0: i32, %arg1: i32) -> (i32, i32) {
    %c0_i32 = arith.constant 0 : i32
    %c0_i32_0 = arith.constant 0 : i32
    return %arg0, %c0_i32 : i32, i32
  }
  func.func @transform_1(%arg0: i32, %arg1: i32) -> (i32, i32) {
    %c0_i32 = arith.constant 0 : i32
    %c0_i32_0 = arith.constant 0 : i32
    return %arg0, %c0_i32 : i32, i32
  }
  func.func @transform_2(%arg0: i32, %arg1: i32) -> (i32, i32) {
    %c0_i32 = arith.constant 0 : i32
    %c0_i32_0 = arith.constant 0 : i32
    return %arg1, %c0_i32 : i32, i32
  }
  func.func @transform_3(%arg0: i32, %arg1: i32) -> (i32, i32) {
    %c0_i32 = arith.constant 0 : i32
    return %arg0, %arg1 : i32, i32
  }
  func.func @transform_4(%arg0: i32, %arg1: i32) -> (i32, i32) {
    %c0_i32 = arith.constant 0 : i32
    %c0_i32_0 = arith.constant 0 : i32
    return %arg0, %c0_i32 : i32, i32
  }
}

</mosaic_0001>

<bundles_post_ra>
// kernel: tpu_custom_call.1
= control target key start
LH: loop header
LB: loop body
LE: loop exit
PB: predicated region body
PF: predicated region fallthrough
CT: control target
= control target key end

     0   :  { %10 = vsyncpa [#allocation5], 0  ;;  %s545_s0 = inlined_call_operand.hbm [shape: f32[8,128], index: 0, kind: input, shape index: {}]   ;;  %s546_s1 = inlined_call_operand.hbm [shape: f32[8,128], index: 1, kind: input, shape index: {}]   ;;  %s547_s2 = inlined_call_operand.hbm [shape: f32[128,128], index: 2, kind: input, shape index: {}]   ;;  %s548_s3 = inlined_call_operand.hbm [shape: f32[8,128], index: 3, kind: output, shape index: {0}]   ;;  %s549_s4 = inlined_call_operand.hbm [shape: f32[8,128], index: 4, kind: output, shape index: {1}]  }
   0x1   :  { %11 = vsyncpa [#allocation8], 0 }
   0x2   :  { %12 = vsyncpa [#allocation6], 0 }
   0x3   :  { %13 = vsyncpa [#allocation12], 0  ;;  %s444_s15 = smov [#allocation7]   ;;  %s445_s17 = smov [#allocation4]  }
   0x4   :  { %s30_s16 = sshll.u32 %s444_s15, 4  ;;  %s20_s18 = sshll.u32 %s445_s17, 4  ;;  %s31_s16 = int_to_ptr.vmem [resolvable:$true] %s30_s16  ;;  %s21_s18 = int_to_ptr.vmem [resolvable:$true] %s20_s18 }
   0x5   :  { %s326_s21 = scalar_lea.hbm %s546_s1, 128 }
   0x6   :  { %p327_p0 = scmp.ne.s32.totalorder %s546_s1, %s326_s21  ;;  %p330_p1 = scmp.lt.u32.totalorder %s326_s21, %s546_s1 }
   0x8   :  { %p332_p2 = pnand %p330_p1, %p327_p0 }
   0xa   :  { %335 = shalt.err (!%p332_p2)
}
   0xb   :  { %s336_s26 = scalar_lea.vmem %s31_s16, 128  ;;  %p341_p4 = scmp.lt.s32.totalorder %s31_s16, %s31_s16 }
   0xc   :  { %p337_p3 = scmp.ne.s32.totalorder %s31_s16, %s336_s26  ;;  %p342_p5 = scmp.lt.s32.totalorder %s336_s26, %s336_s26 }
   0xe   :  { %p343_p6 = por %p342_p5, %p341_p4 }
  0x10   :  { %p344_p7 = pnand %p343_p6, %p337_p3 }
  0x12   :  { %347 = shalt.err (!%p344_p7)
}
  0x13   :  { %33 = dma.hbm_to_vmem [thread:$0]  %s546_s1, 128, %s31_s16, [#allocation8]  }
  0x14   :  { %s348_s5 = scalar_lea.hbm %s545_s0, 128 }
  0x15   :  { %p349_p8 = scmp.ne.s32.totalorder %s545_s0, %s348_s5  ;;  %p352_p9 = scmp.lt.u32.totalorder %s348_s5, %s545_s0 }
  0x17   :  { %p354_p10 = pnand %p352_p9, %p349_p8 }
  0x19   :  { %357 = shalt.err (!%p354_p10)
}
  0x1a   :  { %s358_s10 = scalar_lea.vmem %s21_s18, 128  ;;  %p363_p12 = scmp.lt.s32.totalorder %s21_s18, %s21_s18 }
  0x1b   :  { %p359_p11 = scmp.ne.s32.totalorder %s21_s18, %s358_s10  ;;  %p364_p13 = scmp.lt.s32.totalorder %s358_s10, %s358_s10 }
  0x1d   :  { %p365_p0 = por %p364_p13, %p363_p12 }
  0x1f   :  { %p366_p1 = pnand %p365_p0, %p359_p11 }
  0x21   :  { %369 = shalt.err (!%p366_p1)
}
  0x22   :  { %23 = dma.hbm_to_vmem [thread:$0]  %s545_s0, 128, %s21_s18, [#allocation5]  }
  0x23   :  { %s446_s12 = smov [#allocation9]   ;;  %s370_s16 = scalar_lea.hbm %s547_s2, 2048 }
  0x24   :  { %s39_s13 = sshll.u32 %s446_s12, 4  ;;  %p371_p2 = scmp.ne.s32.totalorder %s547_s2, %s370_s16  ;;  %s40_s13 = int_to_ptr.vmem [resolvable:$true] %s39_s13 }
  0x25   :  { %p374_p3 = scmp.lt.u32.totalorder %s370_s16, %s547_s2 }
  0x27   :  { %p376_p4 = pnand %p374_p3, %p371_p2 }
  0x29   :  { %379 = shalt.err (!%p376_p4)
}
  0x2a   :  { %s380_s22 = scalar_lea.vmem %s40_s13, 2048  ;;  %p385_p6 = scmp.lt.s32.totalorder %s40_s13, %s40_s13 }
  0x2b   :  { %p381_p5 = scmp.ne.s32.totalorder %s40_s13, %s380_s22  ;;  %p386_p7 = scmp.lt.s32.totalorder %s380_s22, %s380_s22 }
  0x2d   :  { %p387_p8 = por %p386_p7, %p385_p6 }
  0x2f   :  { %p388_p9 = pnand %p387_p8, %p381_p5 }
  0x31   :  { %391 = shalt.err (!%p388_p9)
}
  0x32   :  { %s447_s0 = smov 128   ;;  %s448_s18 = smov 8  }
  0x33   :  { %45 = dma.hbm_to_vmem [thread:$0]  %s547_s2, 2048, %s40_s13, [#allocation8], %s447_s0, %s447_s0, %s448_s18  }
  0x34   :  { %436 = dma.done.wait [#allocation5], 128  }
  0x35   :  { %437 = vsyncadd [#allocation5], 4294967168 }
  0x36   :  { %438 = dma.done.wait [#allocation8], 2176  }
  0x37   :  { %439 = vsyncadd [#allocation8], 4294965120  ;;  %vm59_vm0 = vcmask 7168   ;;  %v449_v0 = vmov 0.0|0.0   ;;  %v450_v1 = vmov -1e+30   ;;  %v149_v28 = vlaneseq }
  0x38   :  { %282 = vmatprep.subr.bf16.mxu0 %v449_v0  ;;  %60 = vst.msk [vmem:[#allocation2] sm:$0xff] %vm59_vm0, %v450_v1  ;;  %v451_v2 = vmov 0.0   ;;  %vm452_vm1 = vmmov 0   ;;  %v63_v3 = vld [vmem:[#allocation9] sm:$0xff]  ;;  %v64_v4 = vld [vmem:[#allocation9 + $0x8] sm:$0xff]  ;;  %v65_v6 = vld [vmem:[#allocation9 + $0x10] sm:$0xff] }
  0x39   :  { %61 = vst.msk [vmem:[#allocation3] sm:$0xff] %vm59_vm0, %v451_v2  ;;  %279 = vmatprep.mubr.msk.f32.mxu0 %vm452_vm1, %v451_v2  ;;  %v283_v5 = vpack.c.bf16 %v64_v4, %v63_v3  ;;  %v66_v7 = vld [vmem:[#allocation9 + $0x18] sm:$0xff]  ;;  %v67_v9 = vld [vmem:[#allocation9 + $0x20] sm:$0xff]  ;;  %v68_v10 = vld [vmem:[#allocation9 + $0x28] sm:$0xff]  ;;  %v150_v29 = vand.u32 127, %v149_v28  ;;  %v453_v33 = vmov 0  }
  0x3a   :  { %v286_v8 = vpack.c.bf16 %v66_v7, %v65_v6  ;;  %v289_v11 = vpack.c.bf16 %v68_v10, %v67_v9  ;;  %v69_v12 = vld [vmem:[#allocation9 + $0x30] sm:$0xff]  ;;  %v70_v13 = vld [vmem:[#allocation9 + $0x38] sm:$0xff]  ;;  %v71_v15 = vld [vmem:[#allocation9 + $0x40] sm:$0xff]  ;;  %318 = vset.pattern.permute.xlu0 %v453_v33  ;;  %319 = vset.pattern.permute.xlu1 %v453_v33  ;;  %s454_s2 = smov [#allocation10]  }
  0x3b   :  { %284 = vmatpush3.bf16.xpose.msra.mxu0 %v283_v5  ;;  %v292_v14 = vpack.c.bf16 %v70_v13, %v69_v12  ;;  %v72_v16 = vld [vmem:[#allocation9 + $0x48] sm:$0xff]  ;;  %v73_v18 = vld [vmem:[#allocation9 + $0x50] sm:$0xff]  ;;  %v74_v19 = vld [vmem:[#allocation9 + $0x58] sm:$0xff]  ;;  %vm154_vm2 = vcmp.lt.s32.totalorder %v150_v29, 16  ;;  %s206_s25 = sshll.u32 %s454_s2, 4  ;;  %s207_s25 = int_to_ptr.vmem [resolvable:$true] %s206_s25 }
  0x3c   :  { %285 = vmatprep.subr.bf16.mxu0 %v449_v0  ;;  %v295_v17 = vpack.c.bf16 %v72_v16, %v71_v15  ;;  %v298_v20 = vpack.c.bf16 %v74_v19, %v73_v18  ;;  %v75_v21 = vld [vmem:[#allocation9 + $0x60] sm:$0xff]  ;;  %v76_v22 = vld [vmem:[#allocation9 + $0x68] sm:$0xff]  ;;  %v77_v24 = vld [vmem:[#allocation9 + $0x70] sm:$0xff]  ;;  %s392_s26 = scalar_lea.vmem %s207_s25, 128  ;;  %p397_p11 = scmp.lt.s32.totalorder %s207_s25, %s207_s25 }
  0x3d   :  { %v301_v23 = vpack.c.bf16 %v76_v22, %v75_v21  ;;  %v78_v25 = vld [vmem:[#allocation9 + $0x78] sm:$0xff]  ;;  %v62_v27 = vld [vmem:[#allocation4] sm:$0xff]  ;;  %p393_p10 = scmp.ne.s32.totalorder %s207_s25, %s392_s26  ;;  %p398_p12 = scmp.lt.s32.totalorder %s392_s26, %s392_s26 }
  0x3e   :  { %v304_v26 = vpack.c.bf16 %v78_v25, %v77_v24  ;;  %v184_v41 = vld [vmem:[#allocation7] sm:$0xff] }
  0x3f   :  { %v157_v34 = vld [vmem:[#allocation2] sm:$0xff]  ;;  %v185_v43 = vmul.f32 %v184_v41, %v62_v27  ;;  %p399_p13 = por %p398_p12, %p397_p11 }
  0x40   :  { %v161_v46 = vld [vmem:[#allocation3] sm:$0xff] }
  0x41   :  { %p400_p0 = pnand %p399_p13, %p393_p10 }
  0x43   :  { %287 = vmatpush3.bf16.xpose.msra.mxu0 %v286_v8 }
  0x44   :  { %288 = vmatprep.subr.bf16.mxu0 %v449_v0 }
  0x4b   :  { %290 = vmatpush3.bf16.xpose.msra.mxu0 %v289_v11 }
  0x4c   :  { %291 = vmatprep.subr.bf16.mxu0 %v449_v0 }
  0x53   :  { %293 = vmatpush3.bf16.xpose.msra.mxu0 %v292_v14 }
  0x54   :  { %294 = vmatprep.subr.bf16.mxu0 %v449_v0 }
  0x5b   :  { %296 = vmatpush3.bf16.xpose.msra.mxu0 %v295_v17 }
  0x5c   :  { %297 = vmatprep.subr.bf16.mxu0 %v449_v0 }
  0x63   :  { %299 = vmatpush3.bf16.xpose.msra.mxu0 %v298_v20 }
  0x64   :  { %300 = vmatprep.subr.bf16.mxu0 %v449_v0 }
  0x6b   :  { %302 = vmatpush3.bf16.xpose.msra.mxu0 %v301_v23 }
  0x6c   :  { %303 = vmatprep.subr.bf16.mxu0 %v449_v0 }
  0x73   :  { %305 = vmatpush3.bf16.xpose.msra.mxu0 %v304_v26 }
  0x7a   :  { %280 = vmatmul.mubr.f32.vlgmr.msra.gmra.mrb[0].mxu0 %v62_v27 }
 0x14d   :  { %v145_v30 = vpop.f32.mrb[0].mxu0 }
 0x14e   :  { %v155_v31 = vsel %vm154_vm2, %v145_v30, -1e+30  ;;  %v281_v32 = vpop.f32.mrb[1].mxu0 }
 0x14f   :  { %156 = vst [vmem:[#allocation10] sm:$0xff] %v155_v31  ;;  %158 = vmax.xlane.f32.xlu0 %v155_v31 }
 0x1dc   :  { %v159_v35 = vpop.xlane.xlu0 %158 }
 0x1dd   :  { %v160_v36 = vmax.f32 %v157_v34, %v159_v35 }
 0x1df   :  { %v162_v37 = vsub.f32 %v157_v34, %v160_v36  ;;  %179 = vst.msk [vmem:[#allocation2] sm:$0xff] %vm59_vm0, %v160_v36  ;;  %168 = vperm.xlu0 %318, %v160_v36  }
 0x1e1   :  { %v163_v44 = vmul.f32 1.442695, %v162_v37 }
 0x1e6   :  { %v188_v54 = vld [vmem:[#allocation2] sm:$0xff] }
 0x25e   :  { %v169_v38 = vpop.permute.xlu0 %168 }
 0x25f   :  { %v171_v39 = vsub.f32 %v155_v31, %v169_v38 }
 0x261   :  { %v172_v40 = vmul.f32 1.442695, %v171_v39 }
 0x263   :  { %320 = vpow2.f32 %v172_v40 }
 0x264   :  { %322 = vpow2.f32 %v163_v44 }
 0x26d   :  { %v321_v42 = vpop.eup %320 }
 0x26e   :  { %174 = vadd.xlane.f32.xlu1 %v321_v42  ;;  %v323_v45 = vpop.eup %322 }
 0x26f   :  { %v165_v47 = vmul.f32 %v323_v45, %v161_v46 }
 0x272   :  { %186 = vadd.xlane.f32.xlu1 %v185_v43 }
 0x2fb   :  { %v175_v48 = vpop.xlane.xlu1 %174 }
 0x2fc   :  { %v176_v49 = vadd.f32 %v175_v48, %v165_v47 }
 0x2fe   :  { %178 = vst.msk [vmem:[#allocation3] sm:$0xff] %vm59_vm0, %v176_v49 }
 0x2ff   :  { %v187_v53 = vpop.xlane.xlu1 %186 }
 0x305   :  { %v189_v50 = vld [vmem:[#allocation3] sm:$0xff] }
 0x306   :  { %324 = vlog2.f32 %v189_v50 }
 0x310   :  { %v325_v51 = vpop.eup %324 }
 0x311   :  { %v191_v52 = vmul.f32 0.6931472, %v325_v51 }
 0x313   :  { %v192_v55 = vadd.f32 %v191_v52, %v188_v54 }
 0x315   :  { %v193_v56 = vsub.f32 %v192_v55, %v187_v53 }
 0x317   :  { %196 = vperm.xlu1 %319, %v193_v56  }
 0x318   :  { %403 = shalt.err (!%p400_p0)
}
 0x319   :  { %s404_s29 = scalar_lea.hbm %s548_s3, 128 }
 0x31a   :  { %p405_p1 = scmp.ne.s32.totalorder %s548_s3, %s404_s29  ;;  %p408_p2 = scmp.lt.u32.totalorder %s404_s29, %s548_s3 }
 0x31c   :  { %p410_p3 = pnand %p408_p2, %p405_p1 }
 0x31e   :  { %413 = shalt.err (!%p410_p3)
}
 0x31f   :  { %209 = dma.vmem_to_hbm [thread:$0]  %s207_s25, 128, %s548_s3, [#allocation6]  }
 0x320   :  { %s455_s10 = smov [#allocation11]  }
 0x321   :  { %s216_s1 = sshll.u32 %s455_s10, 4  ;;  %s217_s1 = int_to_ptr.vmem [resolvable:$true] %s216_s1 }
 0x322   :  { %s414_s11 = scalar_lea.vmem %s217_s1, 128  ;;  %p419_p5 = scmp.lt.s32.totalorder %s217_s1, %s217_s1 }
 0x323   :  { %p415_p4 = scmp.ne.s32.totalorder %s217_s1, %s414_s11  ;;  %p420_p6 = scmp.lt.s32.totalorder %s414_s11, %s414_s11 }
 0x325   :  { %p421_p7 = por %p420_p6, %p419_p5 }
 0x327   :  { %p422_p8 = pnand %p421_p7, %p415_p4 }
 0x396   :  { %v197_v57 = vpop.permute.xlu1 %196 }
 0x397   :  { %199 = vst [vmem:[#allocation11] sm:$0xff] %v197_v57 }
 0x398   :  { %425 = shalt.err (!%p422_p8)
}
 0x399   :  { %s426_s14 = scalar_lea.hbm %s549_s4, 128 }
 0x39a   :  { %p427_p9 = scmp.ne.s32.totalorder %s549_s4, %s426_s14  ;;  %p430_p10 = scmp.lt.u32.totalorder %s426_s14, %s549_s4 }
 0x39c   :  { %p432_p11 = pnand %p430_p10, %p427_p9 }
 0x39e   :  { %435 = shalt.err (!%p432_p11)
}
 0x39f   :  { %219 = dma.vmem_to_hbm [thread:$0]  %s217_s1, 128, %s549_s4, [#allocation12]  }
 0x3a0   :  { %440 = dma.done.wait [#allocation6], 128  }
 0x3a1   :  { %441 = vsyncadd [#allocation6], 4294967168 }
 0x3a2   :  { %442 = dma.done.wait [#allocation12], 128  }
 0x3a3   :  { %443 = vsyncadd [#allocation12], 4294967168 }
 0x3a4   :  { %226 = vsyncpa [#allocation5], 1 }
 0x3a5   :  { %227 = vsyncpa [#allocation8], 1 }
 0x3a6   :  { %228 = vsyncpa [#allocation6], 1 }
 0x3a7   :  { %229 = vsyncpa [#allocation12], 1 }

// kernel: tpu_custom_call.1
= control target key start
LH: loop header
LB: loop body
LE: loop exit
PB: predicated region body
PF: predicated region fallthrough
CT: control target
= control target key end

     0   :  { %10 = vsyncpa [#allocation5], 0  ;;  %s545_s0 = inlined_call_operand.hbm [shape: f32[8,128], index: 0, kind: input, shape index: {}]   ;;  %s546_s1 = inlined_call_operand.hbm [shape: f32[8,128], index: 1, kind: input, shape index: {}]   ;;  %s547_s2 = inlined_call_operand.hbm [shape: f32[128,128], index: 2, kind: input, shape index: {}]   ;;  %s548_s3 = inlined_call_operand.hbm [shape: f32[8,128], index: 3, kind: output, shape index: {0}]   ;;  %s549_s4 = inlined_call_operand.hbm [shape: f32[8,128], index: 4, kind: output, shape index: {1}]  }
   0x1   :  { %11 = vsyncpa [#allocation8], 0 }
   0x2   :  { %12 = vsyncpa [#allocation6], 0 }
   0x3   :  { %13 = vsyncpa [#allocation12], 0  ;;  %s444_s15 = smov [#allocation7]   ;;  %s445_s17 = smov [#allocation4]  }
   0x4   :  { %s30_s16 = sshll.u32 %s444_s15, 4  ;;  %s20_s18 = sshll.u32 %s445_s17, 4  ;;  %s31_s16 = int_to_ptr.vmem [resolvable:$true] %s30_s16  ;;  %s21_s18 = int_to_ptr.vmem [resolvable:$true] %s20_s18 }
   0x5   :  { %s326_s21 = scalar_lea.hbm %s546_s1, 128 }
   0x6   :  { %p327_p0 = scmp.ne.s32.totalorder %s546_s1, %s326_s21  ;;  %p330_p1 = scmp.lt.u32.totalorder %s326_s21, %s546_s1 }
   0x8   :  { %p332_p2 = pnand %p330_p1, %p327_p0 }
   0xa   :  { %335 = shalt.err (!%p332_p2)
}
   0xb   :  { %s336_s26 = scalar_lea.vmem %s31_s16, 128  ;;  %p341_p4 = scmp.lt.s32.totalorder %s31_s16, %s31_s16 }
   0xc   :  { %p337_p3 = scmp.ne.s32.totalorder %s31_s16, %s336_s26  ;;  %p342_p5 = scmp.lt.s32.totalorder %s336_s26, %s336_s26 }
   0xe   :  { %p343_p6 = por %p342_p5, %p341_p4 }
  0x10   :  { %p344_p7 = pnand %p343_p6, %p337_p3 }
  0x12   :  { %347 = shalt.err (!%p344_p7)
}
  0x13   :  { %33 = dma.hbm_to_vmem [thread:$0]  %s546_s1, 128, %s31_s16, [#allocation8]  }
  0x14   :  { %s348_s5 = scalar_lea.hbm %s545_s0, 128 }
  0x15   :  { %p349_p8 = scmp.ne.s32.totalorder %s545_s0, %s348_s5  ;;  %p352_p9 = scmp.lt.u32.totalorder %s348_s5, %s545_s0 }
  0x17   :  { %p354_p10 = pnand %p352_p9, %p349_p8 }
  0x19   :  { %357 = shalt.err (!%p354_p10)
}
  0x1a   :  { %s358_s10 = scalar_lea.vmem %s21_s18, 128  ;;  %p363_p12 = scmp.lt.s32.totalorder %s21_s18, %s21_s18 }
  0x1b   :  { %p359_p11 = scmp.ne.s32.totalorder %s21_s18, %s358_s10  ;;  %p364_p13 = scmp.lt.s32.totalorder %s358_s10, %s358_s10 }
  0x1d   :  { %p365_p0 = por %p364_p13, %p363_p12 }
  0x1f   :  { %p366_p1 = pnand %p365_p0, %p359_p11 }
  0x21   :  { %369 = shalt.err (!%p366_p1)
}
  0x22   :  { %23 = dma.hbm_to_vmem [thread:$0]  %s545_s0, 128, %s21_s18, [#allocation5]  }
  0x23   :  { %s446_s12 = smov [#allocation9]   ;;  %s370_s16 = scalar_lea.hbm %s547_s2, 2048 }
  0x24   :  { %s39_s13 = sshll.u32 %s446_s12, 4  ;;  %p371_p2 = scmp.ne.s32.totalorder %s547_s2, %s370_s16  ;;  %s40_s13 = int_to_ptr.vmem [resolvable:$true] %s39_s13 }
  0x25   :  { %p374_p3 = scmp.lt.u32.totalorder %s370_s16, %s547_s2 }
  0x27   :  { %p376_p4 = pnand %p374_p3, %p371_p2 }
  0x29   :  { %379 = shalt.err (!%p376_p4)
}
  0x2a   :  { %s380_s22 = scalar_lea.vmem %s40_s13, 2048  ;;  %p385_p6 = scmp.lt.s32.totalorder %s40_s13, %s40_s13 }
  0x2b   :  { %p381_p5 = scmp.ne.s32.totalorder %s40_s13, %s380_s22  ;;  %p386_p7 = scmp.lt.s32.totalorder %s380_s22, %s380_s22 }
  0x2d   :  { %p387_p8 = por %p386_p7, %p385_p6 }
  0x2f   :  { %p388_p9 = pnand %p387_p8, %p381_p5 }
  0x31   :  { %391 = shalt.err (!%p388_p9)
}
  0x32   :  { %s447_s0 = smov 128   ;;  %s448_s18 = smov 8  }
  0x33   :  { %45 = dma.hbm_to_vmem [thread:$0]  %s547_s2, 2048, %s40_s13, [#allocation8], %s447_s0, %s447_s0, %s448_s18  }
  0x34   :  { %436 = dma.done.wait [#allocation5], 128  }
  0x35   :  { %437 = vsyncadd [#allocation5], 4294967168 }
  0x36   :  { %438 = dma.done.wait [#allocation8], 2176  }
  0x37   :  { %439 = vsyncadd [#allocation8], 4294965120  ;;  %vm59_vm0 = vcmask 7168   ;;  %v449_v0 = vmov 0.0|0.0   ;;  %v450_v1 = vmov -1e+30   ;;  %v149_v28 = vlaneseq }
  0x38   :  { %282 = vmatprep.subr.bf16.mxu0 %v449_v0  ;;  %60 = vst.msk [vmem:[#allocation2] sm:$0xff] %vm59_vm0, %v450_v1  ;;  %v451_v2 = vmov 0.0   ;;  %vm452_vm1 = vmmov 0   ;;  %v63_v3 = vld [vmem:[#allocation9] sm:$0xff]  ;;  %v64_v4 = vld [vmem:[#allocation9 + $0x8] sm:$0xff]  ;;  %v65_v6 = vld [vmem:[#allocation9 + $0x10] sm:$0xff] }
  0x39   :  { %61 = vst.msk [vmem:[#allocation3] sm:$0xff] %vm59_vm0, %v451_v2  ;;  %279 = vmatprep.mubr.msk.f32.mxu0 %vm452_vm1, %v451_v2  ;;  %v283_v5 = vpack.c.bf16 %v64_v4, %v63_v3  ;;  %v66_v7 = vld [vmem:[#allocation9 + $0x18] sm:$0xff]  ;;  %v67_v9 = vld [vmem:[#allocation9 + $0x20] sm:$0xff]  ;;  %v68_v10 = vld [vmem:[#allocation9 + $0x28] sm:$0xff]  ;;  %v150_v29 = vand.u32 127, %v149_v28  ;;  %v453_v33 = vmov 0  }
  0x3a   :  { %v286_v8 = vpack.c.bf16 %v66_v7, %v65_v6  ;;  %v289_v11 = vpack.c.bf16 %v68_v10, %v67_v9  ;;  %v69_v12 = vld [vmem:[#allocation9 + $0x30] sm:$0xff]  ;;  %v70_v13 = vld [vmem:[#allocation9 + $0x38] sm:$0xff]  ;;  %v71_v15 = vld [vmem:[#allocation9 + $0x40] sm:$0xff]  ;;  %318 = vset.pattern.permute.xlu0 %v453_v33  ;;  %319 = vset.pattern.permute.xlu1 %v453_v33  ;;  %s454_s2 = smov [#allocation10]  }
  0x3b   :  { %284 = vmatpush3.bf16.xpose.msra.mxu0 %v283_v5  ;;  %v292_v14 = vpack.c.bf16 %v70_v13, %v69_v12  ;;  %v72_v16 = vld [vmem:[#allocation9 + $0x48] sm:$0xff]  ;;  %v73_v18 = vld [vmem:[#allocation9 + $0x50] sm:$0xff]  ;;  %v74_v19 = vld [vmem:[#allocation9 + $0x58] sm:$0xff]  ;;  %vm154_vm2 = vcmp.lt.s32.totalorder %v150_v29, 16  ;;  %s206_s25 = sshll.u32 %s454_s2, 4  ;;  %s207_s25 = int_to_ptr.vmem [resolvable:$true] %s206_s25 }
  0x3c   :  { %285 = vmatprep.subr.bf16.mxu0 %v449_v0  ;;  %v295_v17 = vpack.c.bf16 %v72_v16, %v71_v15  ;;  %v298_v20 = vpack.c.bf16 %v74_v19, %v73_v18  ;;  %v75_v21 = vld [vmem:[#allocation9 + $0x60] sm:$0xff]  ;;  %v76_v22 = vld [vmem:[#allocation9 + $0x68] sm:$0xff]  ;;  %v77_v24 = vld [vmem:[#allocation9 + $0x70] sm:$0xff]  ;;  %s392_s26 = scalar_lea.vmem %s207_s25, 128  ;;  %p397_p11 = scmp.lt.s32.totalorder %s207_s25, %s207_s25 }
  0x3d   :  { %v301_v23 = vpack.c.bf16 %v76_v22, %v75_v21  ;;  %v78_v25 = vld [vmem:[#allocation9 + $0x78] sm:$0xff]  ;;  %v62_v27 = vld [vmem:[#allocation4] sm:$0xff]  ;;  %p393_p10 = scmp.ne.s32.totalorder %s207_s25, %s392_s26  ;;  %p398_p12 = scmp.lt.s32.totalorder %s392_s26, %s392_s26 }
  0x3e   :  { %v304_v26 = vpack.c.bf16 %v78_v25, %v77_v24  ;;  %v184_v41 = vld [vmem:[#allocation7] sm:$0xff] }
  0x3f   :  { %v157_v34 = vld [vmem:[#allocation2] sm:$0xff]  ;;  %v185_v43 = vmul.f32 %v184_v41, %v62_v27  ;;  %p399_p13 = por %p398_p12, %p397_p11 }
  0x40   :  { %v161_v46 = vld [vmem:[#allocation3] sm:$0xff] }
  0x41   :  { %p400_p0 = pnand %p399_p13, %p393_p10 }
  0x43   :  { %287 = vmatpush3.bf16.xpose.msra.mxu0 %v286_v8 }
  0x44   :  { %288 = vmatprep.subr.bf16.mxu0 %v449_v0 }
  0x4b   :  { %290 = vmatpush3.bf16.xpose.msra.mxu0 %v289_v11 }
  0x4c   :  { %291 = vmatprep.subr.bf16.mxu0 %v449_v0 }
  0x53   :  { %293 = vmatpush3.bf16.xpose.msra.mxu0 %v292_v14 }
  0x54   :  { %294 = vmatprep.subr.bf16.mxu0 %v449_v0 }
  0x5b   :  { %296 = vmatpush3.bf16.xpose.msra.mxu0 %v295_v17 }
  0x5c   :  { %297 = vmatprep.subr.bf16.mxu0 %v449_v0 }
  0x63   :  { %299 = vmatpush3.bf16.xpose.msra.mxu0 %v298_v20 }
  0x64   :  { %300 = vmatprep.subr.bf16.mxu0 %v449_v0 }
  0x6b   :  { %302 = vmatpush3.bf16.xpose.msra.mxu0 %v301_v23 }
  0x6c   :  { %303 = vmatprep.subr.bf16.mxu0 %v449_v0 }
  0x73   :  { %305 = vmatpush3.bf16.xpose.msra.mxu0 %v304_v26 }
  0x7a   :  { %280 = vmatmul.mubr.f32.vlgmr.msra.gmra.mrb[0].mxu0 %v62_v27 }
 0x14d   :  { %v145_v30 = vpop.f32.mrb[0].mxu0 }
 0x14e   :  { %v155_v31 = vsel %vm154_vm2, %v145_v30, -1e+30  ;;  %v281_v32 = vpop.f32.mrb[1].mxu0 }
 0x14f   :  { %156 = vst [vmem:[#allocation10] sm:$0xff] %v155_v31  ;;  %158 = vmax.xlane.f32.xlu0 %v155_v31 }
 0x1dc   :  { %v159_v35 = vpop.xlane.xlu0 %158 }
 0x1dd   :  { %v160_v36 = vmax.f32 %v157_v34, %v159_v35 }
 0x1df   :  { %v162_v37 = vsub.f32 %v157_v34, %v160_v36  ;;  %179 = vst.msk [vmem:[#allocation2] sm:$0xff] %vm59_vm0, %v160_v36  ;;  %168 = vperm.xlu0 %318, %v160_v36  }
 0x1e1   :  { %v163_v44 = vmul.f32 1.442695, %v162_v37 }
 0x1e6   :  { %v188_v54 = vld [vmem:[#allocation2] sm:$0xff] }
 0x25e   :  { %v169_v38 = vpop.permute.xlu0 %168 }
 0x25f   :  { %v171_v39 = vsub.f32 %v155_v31, %v169_v38 }
 0x261   :  { %v172_v40 = vmul.f32 1.442695, %v171_v39 }
 0x263   :  { %320 = vpow2.f32 %v172_v40 }
 0x264   :  { %322 = vpow2.f32 %v163_v44 }
 0x26d   :  { %v321_v42 = vpop.eup %320 }
 0x26e   :  { %174 = vadd.xlane.f32.xlu1 %v321_v42  ;;  %v323_v45 = vpop.eup %322 }
 0x26f   :  { %v165_v47 = vmul.f32 %v323_v45, %v161_v46 }
 0x272   :  { %186 = vadd.xlane.f32.xlu1 %v185_v43 }
 0x2fb   :  { %v175_v48 = vpop.xlane.xlu1 %174 }
 0x2fc   :  { %v176_v49 = vadd.f32 %v175_v48, %v165_v47 }
 0x2fe   :  { %178 = vst.msk [vmem:[#allocation3] sm:$0xff] %vm59_vm0, %v176_v49 }
 0x2ff   :  { %v187_v53 = vpop.xlane.xlu1 %186 }
 0x305   :  { %v189_v50 = vld [vmem:[#allocation3] sm:$0xff] }
 0x306   :  { %324 = vlog2.f32 %v189_v50 }
 0x310   :  { %v325_v51 = vpop.eup %324 }
 0x311   :  { %v191_v52 = vmul.f32 0.6931472, %v325_v51 }
 0x313   :  { %v192_v55 = vadd.f32 %v191_v52, %v188_v54 }
 0x315   :  { %v193_v56 = vsub.f32 %v192_v55, %v187_v53 }
 0x317   :  { %196 = vperm.xlu1 %319, %v193_v56  }
 0x318   :  { %403 = shalt.err (!%p400_p0)
}
 0x319   :  { %s404_s29 = scalar_lea.hbm %s548_s3, 128 }
 0x31a   :  { %p405_p1 = scmp.ne.s32.totalorder %s548_s3, %s404_s29  ;;  %p408_p2 = scmp.lt.u32.totalorder %s404_s29, %s548_s3 }
 0x31c   :  { %p410_p3 = pnand %p408_p2, %p405_p1 }
 0x31e   :  { %413 = shalt.err (!%p410_p3)
}
 0x31f   :  { %209 = dma.vmem_to_hbm [thread:$0]  %s207_s25, 128, %s548_s3, [#allocation6]  }
 0x320   :  { %s455_s10 = smov [#allocation11]  }
 0x321   :  { %s216_s1 = sshll.u32 %s455_s10, 4  ;;  %s217_s1 = int_to_ptr.vmem [resolvable:$true] %s216_s1 }
 0x322   :  { %s414_s11 = scalar_lea.vmem %s217_s1, 128  ;;  %p419_p5 = scmp.lt.s32.totalorder %s217_s1, %s217_s1 }
 0x323   :  { %p415_p4 = scmp.ne.s32.totalorder %s217_s1, %s414_s11  ;;  %p420_p6 = scmp.lt.s32.totalorder %s414_s11, %s414_s11 }
 0x325   :  { %p421_p7 = por %p420_p6, %p419_p5 }
 0x327   :  { %p422_p8 = pnand %p421_p7, %p415_p4 }
 0x396   :  { %v197_v57 = vpop.permute.xlu1 %196 }
 0x397   :  { %199 = vst [vmem:[#allocation11] sm:$0xff] %v197_v57 }
 0x398   :  { %425 = shalt.err (!%p422_p8)
}
 0x399   :  { %s426_s14 = scalar_lea.hbm %s549_s4, 128 }
 0x39a   :  { %p427_p9 = scmp.ne.s32.totalorder %s549_s4, %s426_s14  ;;  %p430_p10 = scmp.lt.u32.totalorder %s426_s14, %s549_s4 }
 0x39c   :  { %p432_p11 = pnand %p430_p10, %p427_p9 }
 0x39e   :  { %435 = shalt.err (!%p432_p11)
}
 0x39f   :  { %219 = dma.vmem_to_hbm [thread:$0]  %s217_s1, 128, %s549_s4, [#allocation12]  }
 0x3a0   :  { %440 = dma.done.wait [#allocation6], 128  }
 0x3a1   :  { %441 = vsyncadd [#allocation6], 4294967168 }
 0x3a2   :  { %442 = dma.done.wait [#allocation12], 128  }
 0x3a3   :  { %443 = vsyncadd [#allocation12], 4294967168 }
 0x3a4   :  { %226 = vsyncpa [#allocation5], 1 }
 0x3a5   :  { %227 = vsyncpa [#allocation8], 1 }
 0x3a6   :  { %228 = vsyncpa [#allocation6], 1 }
 0x3a7   :  { %229 = vsyncpa [#allocation12], 1 }

</bundles_post_ra>
